<compile_context>
chip_gen: v5e
topology: v5e:2x2
jax: 0.10.0
libtpu: 0.0.40
codegen_flags: <defaults>
</compile_context>

<pallas_src>
import functools

import jax
import jax.numpy as jnp
from jax.experimental import pallas as pl
from jax.experimental.pallas import tpu as pltpu


# ------------------------------ Pallas kernel ------------------------------ #

def _channel_attention_kernel(x_ref, w1_ref, b1_ref, w2_ref, b2_ref, out_ref,
                              sum_acc, max_acc, *, hw, thw):
    """Fused avg/max global pooling + shared MLP + sigmoid.

    x_ref   : (N, C, THW) spatial tile of x (NCHW flattened to (N, C, H*W))
    w1_ref  : (C, mid)   b1_ref : (1, mid)
    w2_ref  : (mid, C)   b2_ref : (1, C)
    out_ref : (N, C)     written once, at the last grid step
    sum_acc / max_acc : (N, C) f32 VMEM scratch, persistent across the grid
    """
    t = pl.program_id(0)
    nt = pl.num_programs(0)

    @pl.when(t == 0)
    def _init():
        sum_acc[...] = jnp.zeros_like(sum_acc)
        max_acc[...] = jnp.full_like(max_acc, -jnp.inf)

    xv = x_ref[...].astype(jnp.float32)                       # (N, C, THW)
    if hw % thw != 0:
        # Ragged tail: mask lanes past the true spatial extent.
        lane = jax.lax.broadcasted_iota(jnp.int32, xv.shape, 2)
        valid = (t * thw + lane) < hw
        x_sum = jnp.where(valid, xv, 0.0)
        x_max = jnp.where(valid, xv, -jnp.inf)
    else:
        x_sum = xv
        x_max = xv

    sum_acc[...] += jnp.sum(x_sum, axis=-1)                   # (N, C)
    max_acc[...] = jnp.maximum(max_acc[...], jnp.max(x_max, axis=-1))

    @pl.when(t == nt - 1)
    def _finalize():
        avg = sum_acc[...] * (1.0 / float(hw))                # (N, C)
        mx = max_acc[...]                                     # (N, C)
        w1 = w1_ref[...]
        b1 = b1_ref[...]
        w2 = w2_ref[...]
        b2 = b2_ref[...]
        h_a = jnp.maximum(
            jnp.dot(avg, w1, preferred_element_type=jnp.float32) + b1, 0.0)
        h_m = jnp.maximum(
            jnp.dot(mx, w1, preferred_element_type=jnp.float32) + b1, 0.0)
        o_a = jnp.dot(h_a, w2, preferred_element_type=jnp.float32) + b2
        o_m = jnp.dot(h_m, w2, preferred_element_type=jnp.float32) + b2
        out_ref[...] = jax.nn.sigmoid(o_a + o_m).astype(out_ref.dtype)


def _choose_spatial_tile(rows, hw, vmem_budget_bytes=8 * 1024 * 1024):
    """Pick the spatial (lane) tile: large for pipelining, safe for VMEM.

    Budget covers the double-buffered x block (rows * thw * 4 bytes * 2); kept well
    under the default scoped VMEM limit of every TPU generation (v5e 16 MiB .. v7x 32 MiB).
    """
    max_by_vmem = max(((vmem_budget_bytes // (rows * 4 * 2)) // 128) * 128, 128)
    thw = min(2048, max_by_vmem)
    if thw >= hw:
        return hw          # one block; lane dim equals the full array dim (always legal)
    return thw             # multiple of 128; kernel masks the ragged tail


# -------------------------------- JAX glue --------------------------------- #

def channel_attention_forward(x, params):
    """x: (N, C, H, W) float32 (same NCHW layout as the PyTorch module)."""
    N, C, H, W = x.shape
    HW = H * W
    x3d = x.reshape(N, C, HW)                 # free reshape (contiguous NCHW)

    w1 = params["w1"]                         # (C, mid)
    b1 = params["b1"]                         # (1, mid)
    w2 = params["w2"]                         # (mid, C)
    b2 = params["b2"]                         # (1, C)
    mid = w1.shape[1]

    thw = _choose_spatial_tile(N * C, HW)
    grid = (pl.cdiv(HW, thw),)

    kernel = functools.partial(_channel_attention_kernel, hw=HW, thw=thw)
    out = pl.pallas_call(
        kernel,
        out_shape=jax.ShapeDtypeStruct((N, C), jnp.float32),
        grid=grid,
        in_specs=[
            pl.BlockSpec((N, C, thw), lambda t: (0, 0, t)),   # spatial tile of x
            pl.BlockSpec((C, mid), lambda t: (0, 0)),         # MLP weights (tiny, resident)
            pl.BlockSpec((1, mid), lambda t: (0, 0)),
            pl.BlockSpec((mid, C), lambda t: (0, 0)),
            pl.BlockSpec((1, C), lambda t: (0, 0)),
        ],
        out_specs=pl.BlockSpec((N, C), lambda t: (0, 0)),
        scratch_shapes=[
            pltpu.VMEM((N, C), jnp.float32),                  # running sum
            pltpu.VMEM((N, C), jnp.float32),                  # running max
        ],
        compiler_params=pltpu.CompilerParams(
            dimension_semantics=("arbitrary",),               # spatial axis is a reduction
        ),
    )(x3d, w1, b1, w2, b2)

    return out.reshape(N, C, 1, 1)


def init_params(key, c1, reduction=16):
    """Mirror of nn.Linear default init; weights stored as (in, out) for x @ W."""
    mid = max(c1 // reduction, 1)
    k1, k2, k3, k4 = jax.random.split(key, 4)
    bound1 = 1.0 / (c1 ** 0.5)
    bound2 = 1.0 / (mid ** 0.5)
    return {
        "w1": jax.random.uniform(k1, (c1, mid), jnp.float32, -bound1, bound1),
        "b1": jax.random.uniform(k2, (1, mid), jnp.float32, -bound1, bound1),
        "w2": jax.random.uniform(k3, (mid, c1), jnp.float32, -bound2, bound2),
        "b2": jax.random.uniform(k4, (1, c1), jnp.float32, -bound2, bound2),
    }


def channel_attention_reference(x, params):
    """Pure-JAX reference matching the PyTorch forward."""
    N, C, _, _ = x.shape
    avg = jnp.mean(x, axis=(2, 3))                            # AdaptiveAvgPool2d(1)
    mx = jnp.max(x, axis=(2, 3))                              # AdaptiveMaxPool2d(1)

    def mlp(v):
        h = jnp.maximum(v @ params["w1"] + params["b1"], 0.0)
        return h @ params["w2"] + params["b2"]

    return jax.nn.sigmoid(mlp(avg) + mlp(mx)).reshape(N, C, 1, 1)


if __name__ == "__main__":
    key = jax.random.PRNGKey(0)
    kx, kp = jax.random.split(key)

    # Small shapes consistent with the module: reduction=16 requires C >= 16.
    N, C, H, W = 2, 64, 16, 16
    x = jax.random.normal(kx, (N, C, H, W), dtype=jnp.float32)
    params = init_params(kp, c1=C, reduction=16)

    out = channel_attention_forward(x, params)
    out = jax.block_until_ready(out)

    ref = channel_attention_reference(x, params)

    assert out.shape == (N, C, 1, 1)
    assert bool(jnp.all(jnp.isfinite(out)))
    assert bool(jnp.allclose(out, ref, rtol=1e-5, atol=1e-5))
    print("KERNEL_OK")
</pallas_src>

<mosaic_0001>
module attributes {stable_mosaic.version = 11 : i64} {
  func.func @_channel_attention_kernel(%arg0: i32, %arg1: memref<2x64x256xf32, #tpu.memory_space<vmem>>, %arg2: memref<64x4xf32, #tpu.memory_space<vmem>>, %arg3: memref<1x4xf32, #tpu.memory_space<vmem>>, %arg4: memref<4x64xf32, #tpu.memory_space<vmem>>, %arg5: memref<1x64xf32, #tpu.memory_space<vmem>>, %arg6: memref<2x64xf32, #tpu.memory_space<vmem>>, %arg7: memref<2x64xf32, #tpu.memory_space<vmem>>, %arg8: memref<2x64xf32, #tpu.memory_space<vmem>>) attributes {dimension_semantics = [#tpu.dimension_semantics<arbitrary>], iteration_bounds = array<i64: 1>, scalar_prefetch = 0 : i64, scratch_operands = 2 : i64, tpu.core_type = #tpu.core_type<tc>, window_params = [{transform_indices = @transform_0, window_bounds = array<i64: 2, 64, 256>}, {pipeline_mode = #tpu.pipeline_mode<synchronous>, transform_indices = @transform_1, window_bounds = array<i64: 64, 4>}, {pipeline_mode = #tpu.pipeline_mode<synchronous>, transform_indices = @transform_2, window_bounds = array<i64: 1, 4>}, {pipeline_mode = #tpu.pipeline_mode<synchronous>, transform_indices = @transform_3, window_bounds = array<i64: 4, 64>}, {pipeline_mode = #tpu.pipeline_mode<synchronous>, transform_indices = @transform_4, window_bounds = array<i64: 1, 64>}, {pipeline_mode = #tpu.pipeline_mode<synchronous>, transform_indices = @transform_5, window_bounds = array<i64: 2, 64>}]} {
    %c0_i32 = arith.constant 0 : i32
    %0 = arith.cmpi eq, %arg0, %c0_i32 : i32
    %1 = arith.extui %0 : i1 to i32
    %c0_i32_0 = arith.constant 0 : i32
    %2 = arith.cmpi ne, %1, %c0_i32_0 : i32
    scf.if %2 {
      %cst_14 = arith.constant 0.000000e+00 : f32
      %15 = vector.broadcast %cst_14 : f32 to vector<2x64xf32>
      %c0_15 = arith.constant 0 : index
      %c0_16 = arith.constant 0 : index
      %16 = vector.load %arg7[%c0_15, %c0_16] : memref<2x64xf32, #tpu.memory_space<vmem>>, vector<2x64xf32>
      tpu.vector_store %arg7[%c0_15, %c0_16], %15 {strides = array<i32>} : memref<2x64xf32, #tpu.memory_space<vmem>>, vector<2x64xf32>,
      %cst_17 = arith.constant 0xFF800000 : f32
      %17 = vector.broadcast %cst_17 : f32 to vector<2x64xf32>
      %c0_18 = arith.constant 0 : index
      %c0_19 = arith.constant 0 : index
      %18 = vector.load %arg8[%c0_18, %c0_19] : memref<2x64xf32, #tpu.memory_space<vmem>>, vector<2x64xf32>
      tpu.vector_store %arg8[%c0_18, %c0_19], %17 {strides = array<i32>} : memref<2x64xf32, #tpu.memory_space<vmem>>, vector<2x64xf32>,
    } else {
    }
    %c0 = arith.constant 0 : index
    %c0_1 = arith.constant 0 : index
    %c0_2 = arith.constant 0 : index
    %3 = vector.load %arg1[%c0, %c0_1, %c0_2] : memref<2x64x256xf32, #tpu.memory_space<vmem>>, vector<2x64x256xf32>
    %c0_3 = arith.constant 0 : index
    %c0_4 = arith.constant 0 : index
    %4 = vector.load %arg7[%c0_3, %c0_4] : memref<2x64xf32, #tpu.memory_space<vmem>>, vector<2x64xf32>
    %cst = arith.constant dense<0.000000e+00> : vector<2x64xf32>
    %5 = vector.multi_reduction <add>, %3, %cst [2] : vector<2x64x256xf32> to vector<2x64xf32>
    %6 = arith.addf %4, %5 : vector<2x64xf32>
    %c0_5 = arith.constant 0 : index
    %c0_6 = arith.constant 0 : index
    %7 = vector.load %arg7[%c0_5, %c0_6] : memref<2x64xf32, #tpu.memory_space<vmem>>, vector<2x64xf32>
    tpu.vector_store %arg7[%c0_5, %c0_6], %6 {strides = array<i32>} : memref<2x64xf32, #tpu.memory_space<vmem>>, vector<2x64xf32>,
    %c0_7 = arith.constant 0 : index
    %c0_8 = arith.constant 0 : index
    %8 = vector.load %arg8[%c0_7, %c0_8] : memref<2x64xf32, #tpu.memory_space<vmem>>, vector<2x64xf32>
    %cst_9 = arith.constant dense<0xFF800000> : vector<2x64xf32>
    %9 = vector.multi_reduction <maximumf>, %3, %cst_9 [2] : vector<2x64x256xf32> to vector<2x64xf32>
    %10 = arith.maximumf %8, %9 : vector<2x64xf32>
    %c0_10 = arith.constant 0 : index
    %c0_11 = arith.constant 0 : index
    %11 = vector.load %arg8[%c0_10, %c0_11] : memref<2x64xf32, #tpu.memory_space<vmem>>, vector<2x64xf32>
    tpu.vector_store %arg8[%c0_10, %c0_11], %10 {strides = array<i32>} : memref<2x64xf32, #tpu.memory_space<vmem>>, vector<2x64xf32>,
    %c0_i32_12 = arith.constant 0 : i32
    %12 = arith.cmpi eq, %arg0, %c0_i32_12 : i32
    %13 = arith.extui %12 : i1 to i32
    %c0_i32_13 = arith.constant 0 : i32
    %14 = arith.cmpi ne, %13, %c0_i32_13 : i32
    scf.if %14 {
      %c0_14 = arith.constant 0 : index
      %c0_15 = arith.constant 0 : index
      %15 = vector.load %arg7[%c0_14, %c0_15] : memref<2x64xf32, #tpu.memory_space<vmem>>, vector<2x64xf32>
      %cst_16 = arith.constant 3.906250e-03 : f32
      %16 = vector.broadcast %cst_16 : f32 to vector<2x64xf32>
      %17 = arith.mulf %15, %16 : vector<2x64xf32>
      %c0_17 = arith.constant 0 : index
      %c0_18 = arith.constant 0 : index
      %18 = vector.load %arg8[%c0_17, %c0_18] : memref<2x64xf32, #tpu.memory_space<vmem>>, vector<2x64xf32>
      %c0_19 = arith.constant 0 : index
      %c0_20 = arith.constant 0 : index
      %19 = vector.load %arg2[%c0_19, %c0_20] : memref<64x4xf32, #tpu.memory_space<vmem>>, vector<64x4xf32>
      %c0_21 = arith.constant 0 : index
      %c0_22 = arith.constant 0 : index
      %20 = vector.load %arg3[%c0_21, %c0_22] : memref<1x4xf32, #tpu.memory_space<vmem>>, vector<1x4xf32>
      %c0_23 = arith.constant 0 : index
      %c0_24 = arith.constant 0 : index
      %21 = vector.load %arg4[%c0_23, %c0_24] : memref<4x64xf32, #tpu.memory_space<vmem>>, vector<4x64xf32>
      %c0_25 = arith.constant 0 : index
      %c0_26 = arith.constant 0 : index
      %22 = vector.load %arg5[%c0_25, %c0_26] : memref<1x64xf32, #tpu.memory_space<vmem>>, vector<1x64xf32>
      %cst_27 = arith.constant dense<0.000000e+00> : vector<2x4xf32>
      %23 = tpu.matmul %17, %19, %cst_27 {dimension_numbers = #tpu.dot_dimension_numbers<[1], [0], [0], [1], [0, 0, 1, 1], [], []>} : vector<2x64xf32>, vector<64x4xf32>, vector<2x4xf32> -> vector<2x4xf32>
      %24 = vector.broadcast %20 : vector<1x4xf32> to vector<2x4xf32>
      %25 = arith.addf %23, %24 : vector<2x4xf32>
      %cst_28 = arith.constant 0.000000e+00 : f32
      %26 = vector.broadcast %cst_28 : f32 to vector<2x4xf32>
      %27 = arith.maximumf %25, %26 : vector<2x4xf32>
      %cst_29 = arith.constant dense<0.000000e+00> : vector<2x4xf32>
      %28 = tpu.matmul %18, %19, %cst_29 {dimension_numbers = #tpu.dot_dimension_numbers<[1], [0], [0], [1], [0, 0, 1, 1], [], []>} : vector<2x64xf32>, vector<64x4xf32>, vector<2x4xf32> -> vector<2x4xf32>
      %29 = vector.broadcast %20 : vector<1x4xf32> to vector<2x4xf32>
      %30 = arith.addf %28, %29 : vector<2x4xf32>
      %cst_30 = arith.constant 0.000000e+00 : f32
      %31 = vector.broadcast %cst_30 : f32 to vector<2x4xf32>
      %32 = arith.maximumf %30, %31 : vector<2x4xf32>
      %cst_31 = arith.constant dense<0.000000e+00> : vector<2x64xf32>
      %33 = tpu.matmul %27, %21, %cst_31 {dimension_numbers = #tpu.dot_dimension_numbers<[1], [0], [0], [1], [0, 0, 1, 1], [], []>} : vector<2x4xf32>, vector<4x64xf32>, vector<2x64xf32> -> vector<2x64xf32>
      %34 = vector.broadcast %22 : vector<1x64xf32> to vector<2x64xf32>
      %35 = arith.addf %33, %34 : vector<2x64xf32>
      %cst_32 = arith.constant dense<0.000000e+00> : vector<2x64xf32>
      %36 = tpu.matmul %32, %21, %cst_32 {dimension_numbers = #tpu.dot_dimension_numbers<[1], [0], [0], [1], [0, 0, 1, 1], [], []>} : vector<2x4xf32>, vector<4x64xf32>, vector<2x64xf32> -> vector<2x64xf32>
      %37 = vector.broadcast %22 : vector<1x64xf32> to vector<2x64xf32>
      %38 = arith.addf %36, %37 : vector<2x64xf32>
      %39 = arith.addf %35, %38 : vector<2x64xf32>
      %40 = arith.negf %39 : vector<2x64xf32>
      %41 = math.exp %40 : vector<2x64xf32>
      %cst_33 = arith.constant 1.000000e+00 : f32
      %42 = vector.broadcast %cst_33 : f32 to vector<2x64xf32>
      %43 = arith.addf %42, %41 : vector<2x64xf32>
      %44 = arith.divf %42, %43 : vector<2x64xf32>
      %c0_34 = arith.constant 0 : index
      %c0_35 = arith.constant 0 : index
      %45 = vector.load %arg6[%c0_34, %c0_35] : memref<2x64xf32, #tpu.memory_space<vmem>>, vector<2x64xf32>
      tpu.vector_store %arg6[%c0_34, %c0_35], %44 {strides = array<i32>} : memref<2x64xf32, #tpu.memory_space<vmem>>, vector<2x64xf32>,
    } else {
    }
    return
  }
  func.func @transform_0(%arg0: i32) -> (i32, i32, i32) {
    %c0_i32 = arith.constant 0 : i32
    %c0_i32_0 = arith.constant 0 : i32
    %c0_i32_1 = arith.constant 0 : i32
    return %c0_i32, %c0_i32_0, %arg0 : i32, i32, i32
  }
  func.func @transform_1(%arg0: i32) -> (i32, i32) {
    %c0_i32 = arith.constant 0 : i32
    %c0_i32_0 = arith.constant 0 : i32
    %c0_i32_1 = arith.constant 0 : i32
    return %c0_i32, %c0_i32_0 : i32, i32
  }
  func.func @transform_2(%arg0: i32) -> (i32, i32) {
    %c0_i32 = arith.constant 0 : i32
    %c0_i32_0 = arith.constant 0 : i32
    %c0_i32_1 = arith.constant 0 : i32
    return %c0_i32, %c0_i32_0 : i32, i32
  }
  func.func @transform_3(%arg0: i32) -> (i32, i32) {
    %c0_i32 = arith.constant 0 : i32
    %c0_i32_0 = arith.constant 0 : i32
    %c0_i32_1 = arith.constant 0 : i32
    return %c0_i32, %c0_i32_0 : i32, i32
  }
  func.func @transform_4(%arg0: i32) -> (i32, i32) {
    %c0_i32 = arith.constant 0 : i32
    %c0_i32_0 = arith.constant 0 : i32
    %c0_i32_1 = arith.constant 0 : i32
    return %c0_i32, %c0_i32_0 : i32, i32
  }
  func.func @transform_5(%arg0: i32) -> (i32, i32) {
    %c0_i32 = arith.constant 0 : i32
    %c0_i32_0 = arith.constant 0 : i32
    %c0_i32_1 = arith.constant 0 : i32
    return %c0_i32, %c0_i32_0 : i32, i32
  }
}

</mosaic_0001>

<bundles_post_ra>
// kernel: tpu_custom_call.1
= control target key start
LH: loop header
LB: loop body
LE: loop exit
PB: predicated region body
PF: predicated region fallthrough
CT: control target
= control target key end

     0   :  { %10 = vsyncpa [#allocation5], 0  ;;  %s757_s0 = inlined_call_operand.hbm [shape: f32[2,64,256], index: 0, kind: input, shape index: {}]   ;;  %s758_s1 = inlined_call_operand.vmem [shape: f32[64,4], index: 1, kind: input, shape index: {}]   ;;  %s759_s2 = inlined_call_operand.vmem [shape: f32[1,4], index: 2, kind: input, shape index: {}]   ;;  %s760_s3 = inlined_call_operand.vmem [shape: f32[4,64], index: 3, kind: input, shape index: {}]   ;;  %s761_s4 = inlined_call_operand.vmem [shape: f32[1,64], index: 4, kind: input, shape index: {}]   ;;  %s762_s5 = inlined_call_operand.hbm [shape: f32[2,64], index: 5, kind: output, shape index: {}]  }
   0x1   :  { %11 = vsyncpa [#allocation6], 0  ;;  %s16_s20 = sshll.u32 %s757_s0, 4  ;;  %s524_s21 = smov [#allocation4]   ;;  %s17_s20 = int_to_ptr.hbm [resolvable:$true] %s16_s20 }
   0x2   :  { %s18_s22 = sshll.u32 %s524_s21, 4  ;;  %s525_s23 = smov 256   ;;  %s19_s22 = int_to_ptr.vmem [resolvable:$true] %s18_s22 }
   0x3   :  { %s526_s24 = smov 16  }
   0x4   :  { %24 = dma.hbm_to_vmem [thread:$0]  %s17_s20, 4096, %s19_s22, [#allocation5], %s525_s23, %s525_s23, %s526_s24  }
   0x5   :  { %520 = dma.done.wait [#allocation5], 4096  }
   0x6   :  { %521 = vsyncadd [#allocation5], 4294963200  ;;  %v60_v0 = vld [vmem:[#allocation4 + $0x80] sm:$0xff]  ;;  %v61_v1 = vld [vmem:[#allocation4 + $0x88] sm:$0xff]  ;;  %vm41_vm0 = vcmask 517120   ;;  %vm146_vm1 = vcmask 130112  }
   0x7   :  { %v48_v2 = vld [vmem:[#allocation4 + $0x20] sm:$0xff]  ;;  %v101_v3 = vadd.f32 %v61_v1, %v60_v0  ;;  %v49_v4 = vld [vmem:[#allocation4 + $0x28] sm:$0xff]  ;;  %v62_v9 = vld [vmem:[#allocation4 + $0x90] sm:$0xff]  ;;  %v218_v25 = vmax.f32 %v60_v0, %v61_v1  ;;  %vm150_vm2 = vcmask 195712   ;;  %vm154_vm3 = vcmask 261312   ;;  %s443_s21 = sshll.u32 %s762_s5, 4  ;;  %s444_s21 = int_to_ptr.hbm [resolvable:$true] %s443_s21 }
   0x8   :  { %v44_v5 = vld [vmem:[#allocation4] sm:$0xff]  ;;  %v45_v6 = vld [vmem:[#allocation4 + $0x8] sm:$0xff]  ;;  %v83_v7 = vadd.f32 %v49_v4, %v48_v2  ;;  %v63_v10 = vld [vmem:[#allocation4 + $0x98] sm:$0xff]  ;;  %v200_v33 = vmax.f32 %v48_v2, %v49_v4  ;;  %vm158_vm4 = vcmask 326912   ;;  %vm162_vm5 = vcmask 392512  }
   0x9   :  { %v77_v8 = vadd.f32 %v45_v6, %v44_v5  ;;  %102 = vadd.xlane.f32.xlu1 %v101_v3  ;;  %v64_v11 = vld [vmem:[#allocation4 + $0xa0] sm:$0xff]  ;;  %v65_v12 = vld [vmem:[#allocation4 + $0xa8] sm:$0xff]  ;;  %v46_v13 = vld [vmem:[#allocation4 + $0x10] sm:$0xff]  ;;  %v104_v15 = vadd.f32 %v63_v10, %v62_v9  ;;  %v194_v23 = vmax.f32 %v44_v5, %v45_v6  ;;  %v221_v26 = vmax.f32 %v62_v9, %v63_v10 }
   0xa   :  { %84 = vadd.xlane.f32.xlu2 %v83_v7  ;;  %v47_v14 = vld [vmem:[#allocation4 + $0x18] sm:$0xff]  ;;  %v107_v16 = vadd.f32 %v65_v12, %v64_v11  ;;  %v66_v18 = vld [vmem:[#allocation4 + $0xb0] sm:$0xff]  ;;  %v68_v28 = vld [vmem:[#allocation4 + $0xc0] sm:$0xff]  ;;  %v224_v41 = vmax.f32 %v64_v11, %v65_v12  ;;  %v527_v12 = vmov 0.0   ;;  %vm166_vm6 = vcmask 458112  }
   0xb   :  { %78 = vadd.xlane.f32.xlu0 %v77_v8  ;;  %v80_v17 = vadd.f32 %v47_v14, %v46_v13  ;;  %v67_v19 = vld [vmem:[#allocation4 + $0xb8] sm:$0xff]  ;;  %v50_v20 = vld [vmem:[#allocation4 + $0x30] sm:$0xff]  ;;  %v197_v27 = vmax.f32 %v46_v13, %v47_v14  ;;  %v69_v29 = vld [vmem:[#allocation4 + $0xc8] sm:$0xff]  ;;  %42 = vst.msk [vmem:[#allocation2] sm:$0x3] %vm41_vm0, %v527_v12  ;;  %vm170_vm7 = vcmask 523712  }
   0xc   :  { %v51_v21 = vld [vmem:[#allocation4 + $0x38] sm:$0xff]  ;;  %v110_v22 = vadd.f32 %v67_v19, %v66_v18  ;;  %v52_v30 = vld [vmem:[#allocation4 + $0x40] sm:$0xff]  ;;  %v53_v31 = vld [vmem:[#allocation4 + $0x48] sm:$0xff]  ;;  %v113_v32 = vadd.f32 %v69_v29, %v68_v28  ;;  %v227_v44 = vmax.f32 %v66_v18, %v67_v19  ;;  %v230_v50 = vmax.f32 %v68_v28, %v69_v29 }
   0xd   :  { %v86_v24 = vadd.f32 %v51_v21, %v50_v20  ;;  %v89_v34 = vadd.f32 %v53_v31, %v52_v30  ;;  %v54_v35 = vld [vmem:[#allocation4 + $0x50] sm:$0xff]  ;;  %v55_v36 = vld [vmem:[#allocation4 + $0x58] sm:$0xff]  ;;  %v56_v42 = vld [vmem:[#allocation4 + $0x60] sm:$0xff]  ;;  %v203_v46 = vmax.f32 %v50_v20, %v51_v21  ;;  %v206_v49 = vmax.f32 %v52_v30, %v53_v31 }
   0xe   :  { %v70_v37 = vld [vmem:[#allocation4 + $0xd0] sm:$0xff]  ;;  %v71_v38 = vld [vmem:[#allocation4 + $0xd8] sm:$0xff]  ;;  %v92_v39 = vadd.f32 %v55_v36, %v54_v35  ;;  %v57_v43 = vld [vmem:[#allocation4 + $0x68] sm:$0xff]  ;;  %v209_v57 = vmax.f32 %v54_v35, %v55_v36  ;;  %v528_v28 = vmov -inf   ;;  %vm187_vm8 = vcmask 1041409  }
   0xf   :  { %v116_v40 = vadd.f32 %v71_v38, %v70_v37  ;;  %v95_v45 = vadd.f32 %v57_v43, %v56_v42  ;;  %v72_v47 = vld [vmem:[#allocation4 + $0xe0] sm:$0xff]  ;;  %v73_v48 = vld [vmem:[#allocation4 + $0xe8] sm:$0xff]  ;;  %v74_v52 = vld [vmem:[#allocation4 + $0xf0] sm:$0xff]  ;;  %v212_v59 = vmax.f32 %v56_v42, %v57_v43  ;;  %v233_v60 = vmax.f32 %v70_v37, %v71_v38  ;;  %43 = vst.msk [vmem:[#allocation3] sm:$0x3] %vm41_vm0, %v528_v28 }
  0x10   :  { %v119_v51 = vadd.f32 %v73_v48, %v72_v47  ;;  %v75_v53 = vld [vmem:[#allocation4 + $0xf8] sm:$0xff]  ;;  %v58_v54 = vld [vmem:[#allocation4 + $0x70] sm:$0xff]  ;;  %v236_v61 = vmax.f32 %v72_v47, %v73_v48  ;;  %v303_v18 = vld [vmem:[%s758_s1 + $0x28] sm:$0xff]  ;;  %vm312_vm9 = vcmask 523264   ;;  %vm368_vm10 = vcmask 1043456  }
  0x11   :  { %105 = vadd.xlane.f32.xlu1 %v104_v15  ;;  %v59_v55 = vld [vmem:[#allocation4 + $0x78] sm:$0xff]  ;;  %v122_v56 = vadd.f32 %v75_v53, %v74_v52  ;;  %v239_v62 = vmax.f32 %v74_v52, %v75_v53  ;;  %vm364_vm11 = vcmask 31744  }
  0x12   :  { %108 = vadd.xlane.f32.xlu2 %v107_v16  ;;  %v98_v58 = vadd.f32 %v59_v55, %v58_v54  ;;  %v215_v63 = vmax.f32 %v58_v54, %v59_v55  ;;  %v305_v16 = vld [vmem:[%s758_s1 + $0x38] sm:$0xff]  ;;  %v302_v20 = vld [vmem:[%s758_s1 + $0x20] sm:$0xff] }
  0x13   :  { %81 = vadd.xlane.f32.xlu0 %v80_v17  ;;  %324 = vmatpush.msra.mxu0 %v305_v16  ;;  %v304_v17 = vld [vmem:[%s758_s1 + $0x30] sm:$0xff] }
  0x14   :  { %348 = vmatpush.msra.mxu1 %v305_v16  ;;  %v76_v16 = vld [vmem:[#allocation2] sm:$0x3] }
  0x15   :  { %325 = vmatpush.msra.mxu0 %v304_v17 }
  0x16   :  { %349 = vmatpush.msra.mxu1 %v304_v17 }
  0x17   :  { %326 = vmatpush.msra.mxu0 %v303_v18 }
  0x18   :  { %350 = vmatpush.msra.mxu1 %v303_v18 }
  0x19   :  { %111 = vadd.xlane.f32.xlu1 %v110_v22  ;;  %327 = vmatpush.msra.mxu0 %v302_v20 }
  0x1a   :  { %195 = vmax.xlane.f32.xlu2 %v194_v23  ;;  %351 = vmatpush.msra.mxu1 %v302_v20  ;;  %v301_v23 = vld [vmem:[%s758_s1 + $0x18] sm:$0xff] }
  0x1b   :  { %87 = vadd.xlane.f32.xlu0 %v86_v24  ;;  %328 = vmatpush.msra.mxu0 %v301_v23  ;;  %v300_v24 = vld [vmem:[%s758_s1 + $0x10] sm:$0xff] }
  0x1c   :  { %352 = vmatpush.msra.mxu1 %v301_v23 }
  0x1d   :  { %329 = vmatpush.msra.mxu0 %v300_v24 }
  0x1e   :  { %353 = vmatpush.msra.mxu1 %v300_v24 }
  0x21   :  { %219 = vmax.xlane.f32.xlu1 %v218_v25  ;;  %v141_v25 = vlaneseq }
  0x22   :  { %222 = vmax.xlane.f32.xlu2 %v221_v26  ;;  %v299_v26 = vld [vmem:[%s758_s1 + $0x8] sm:$0xff] }
  0x23   :  { %198 = vmax.xlane.f32.xlu0 %v197_v27  ;;  %v298_v27 = vld [vmem:[%s758_s1] sm:$0xff]  ;;  %330 = vmatpush.msra.mxu0 %v299_v26  ;;  %v627_v30 = vand.u32 127, %v141_v25 }
  0x24   :  { %354 = vmatpush.msra.mxu1 %v299_v26 }
  0x25   :  { %331 = vmatpush.msra.mxu0 %v298_v27  ;;  %v637_v35 = vadd.s32 4294967272, %v627_v30  ;;  %v640_v36 = vadd.s32 4294967280, %v627_v30  ;;  %v645_v38 = vadd.s32 4294967264, %v627_v30  ;;  %v664_v48 = vadd.s32 4294967248, %v627_v30 }
  0x26   :  { %355 = vmatpush.msra.mxu1 %v298_v27  ;;  %v678_v55 = vadd.s32 4294967240, %v627_v30 }
  0x29   :  { %114 = vadd.xlane.f32.xlu1 %v113_v32 }
  0x2a   :  { %201 = vmax.xlane.f32.xlu2 %v200_v33  ;;  %v632_v33 = vadd.s32 4294967288, %v627_v30 }
  0x2b   :  { %90 = vadd.xlane.f32.xlu0 %v89_v34 }
  0x31   :  { %93 = vadd.xlane.f32.xlu1 %v92_v39 }
  0x32   :  { %117 = vadd.xlane.f32.xlu2 %v116_v40 }
  0x33   :  { %225 = vmax.xlane.f32.xlu0 %v224_v41  ;;  %v652_v41 = vadd.s32 4294967256, %v627_v30 }
  0x39   :  { %228 = vmax.xlane.f32.xlu1 %v227_v44 }
  0x3a   :  { %96 = vadd.xlane.f32.xlu2 %v95_v45 }
  0x3b   :  { %204 = vmax.xlane.f32.xlu0 %v203_v46 }
  0x41   :  { %207 = vmax.xlane.f32.xlu1 %v206_v49 }
  0x42   :  { %231 = vmax.xlane.f32.xlu2 %v230_v50 }
  0x43   :  { %120 = vadd.xlane.f32.xlu0 %v119_v51 }
  0x49   :  { %123 = vadd.xlane.f32.xlu1 %v122_v56 }
  0x4a   :  { %210 = vmax.xlane.f32.xlu2 %v209_v57 }
  0x4b   :  { %99 = vadd.xlane.f32.xlu0 %v98_v58 }
  0x51   :  { %213 = vmax.xlane.f32.xlu1 %v212_v59 }
  0x52   :  { %237 = vmax.xlane.f32.xlu2 %v236_v61 }
  0x53   :  { %234 = vmax.xlane.f32.xlu0 %v233_v60 }
  0x59   :  { %240 = vmax.xlane.f32.xlu1 %v239_v62 }
  0x5b   :  { %216 = vmax.xlane.f32.xlu0 %v215_v63 }
  0x7c   :  { %v563_v0 = vpop.xlane.xlu1 %102 }
  0x7d   :  { %v565_v1 = vpop.xlane.xlu2 %84  ;;  %v172_v40 = vperm.slane %v563_v0, %v627_v30 }
  0x7e   :  { %v567_v2 = vpop.xlane.xlu0 %78  ;;  %v149_v52 = vperm.slane %v565_v1, %v640_v36 }
  0x7f   :  { %v143_v44 = vperm.slane %v567_v2, %v627_v30 }
  0x84   :  { %v569_v3 = vpop.xlane.xlu1 %105 }
  0x85   :  { %v571_v4 = vpop.xlane.xlu2 %108  ;;  %v173_v34 = vperm.slane %v569_v3, %v632_v33 }
  0x86   :  { %v573_v5 = vpop.xlane.xlu0 %81  ;;  %v175_v45 = vperm.slane %v571_v4, %v640_v36 }
  0x87   :  { %v145_v37 = vperm.slane %v573_v5, %v632_v33  ;;  %v174_v46 = vsel %vm146_vm1, %v173_v34, %v172_v40 }
  0x88   :  { %v176_v56 = vsel %vm150_vm2, %v175_v45, %v174_v46 }
  0x89   :  { %v147_v49 = vsel %vm146_vm1, %v145_v37, %v143_v44 }
  0x8a   :  { %v151_v60 = vsel %vm150_vm2, %v149_v52, %v147_v49 }
  0x8c   :  { %v575_v6 = vpop.xlane.xlu1 %111 }
  0x8d   :  { %v577_v7 = vpop.xlane.xlu2 %195  ;;  %v177_v47 = vperm.slane %v575_v6, %v637_v35 }
  0x8e   :  { %v579_v8 = vpop.xlane.xlu0 %87  ;;  %v258_v27 = vperm.slane %v577_v7, %v627_v30 }
  0x8f   :  { %v153_v50 = vperm.slane %v579_v8, %v637_v35  ;;  %v178_v59 = vsel %vm154_vm3, %v177_v47, %v176_v56 }
  0x91   :  { %v155_v62 = vsel %vm154_vm3, %v153_v50, %v151_v60 }
  0x94   :  { %v581_v9 = vpop.xlane.xlu1 %219 }
  0x95   :  { %v583_v10 = vpop.xlane.xlu2 %222  ;;  %v273_v20 = vperm.slane %v581_v9, %v627_v30 }
  0x96   :  { %v585_v11 = vpop.xlane.xlu0 %198 }
  0x97   :  { %v259_v28 = vperm.slane %v585_v11, %v632_v33 }
  0x99   :  { %v260_v30 = vsel %vm146_vm1, %v259_v28, %v258_v27 }
  0x9c   :  { %v588_v13 = vpop.xlane.xlu1 %114 }
  0x9d   :  { %v590_v14 = vpop.xlane.xlu2 %201  ;;  %v179_v51 = vperm.slane %v588_v13, %v645_v38 }
  0x9e   :  { %v592_v15 = vpop.xlane.xlu0 %90 }
  0x9f   :  { %v157_v53 = vperm.slane %v592_v15, %v645_v38  ;;  %v180_v63 = vsel %vm158_vm4, %v179_v51, %v178_v59  ;;  %v193_v51 = vld [vmem:[#allocation3] sm:$0x3] }
  0xa1   :  { %v159_v1 = vsel %vm158_vm4, %v157_v53, %v155_v62 }
  0xa4   :  { %v603_v19 = vpop.xlane.xlu1 %93 }
  0xa5   :  { %v608_v21 = vpop.xlane.xlu2 %117  ;;  %v161_v57 = vperm.slane %v603_v19, %v652_v41 }
  0xa6   :  { %v610_v22 = vpop.xlane.xlu0 %225  ;;  %v181_v54 = vperm.slane %v608_v21, %v652_v41  ;;  %v274_v21 = vperm.slane %v583_v10, %v632_v33 }
  0xa7   :  { %v163_v6 = vsel %vm162_vm5, %v161_v57, %v159_v1  ;;  %v276_v23 = vperm.slane %v610_v22, %v640_v36  ;;  %v261_v22 = vperm.slane %v590_v14, %v640_v36  ;;  %v466_v57 = vld [vmem:[%s759_s2] ss:$0 sm:$0xff]  ;;  %s529_s2 = smov [#allocation7]  }
  0xa8   :  { %v182_v2 = vsel %vm162_vm5, %v181_v54, %v180_v63  ;;  %v275_v10 = vsel %vm146_vm1, %v274_v21, %v273_v20 }
  0xa9   :  { %v262_v36 = vsel %vm150_vm2, %v261_v22, %v260_v30 }
  0xac   :  { %v625_v29 = vpop.xlane.xlu1 %228 }
  0xad   :  { %v97_v31 = vpop.xlane.xlu2 %96  ;;  %v278_v25 = vperm.slane %v625_v29, %v637_v35  ;;  %v277_v29 = vsel %vm150_vm2, %v276_v23, %v275_v10 }
  0xae   :  { %v629_v32 = vpop.xlane.xlu0 %204  ;;  %v165_v61 = vperm.slane %v97_v31, %v664_v48 }
  0xaf   :  { %v263_v37 = vperm.slane %v629_v32, %v637_v35  ;;  %v279_v7 = vsel %vm154_vm3, %v278_v25, %v277_v29 }
  0xb0   :  { %v167_v13 = vsel %vm166_vm6, %v165_v61, %v163_v6 }
  0xb1   :  { %v264_v35 = vsel %vm154_vm3, %v263_v37, %v262_v36 }
  0xb4   :  { %v647_v39 = vpop.xlane.xlu1 %207 }
  0xb5   :  { %v654_v42 = vpop.xlane.xlu2 %231  ;;  %v265_v11 = vperm.slane %v647_v39, %v645_v38 }
  0xb6   :  { %v121_v43 = vpop.xlane.xlu0 %120  ;;  %v280_v9 = vperm.slane %v654_v42, %v645_v38 }
  0xb7   :  { %v183_v58 = vperm.slane %v121_v43, %v664_v48  ;;  %v266_v39 = vsel %vm158_vm4, %v265_v11, %v264_v35 }
  0xb8   :  { %v281_v33 = vsel %vm158_vm4, %v280_v9, %v279_v7 }
  0xb9   :  { %v184_v8 = vsel %vm166_vm6, %v183_v58, %v182_v2 }
  0xbc   :  { %v124_v0 = vpop.xlane.xlu1 %123 }
  0xbd   :  { %v185_v3 = vperm.slane %v124_v0, %v678_v55  ;;  %v211_v4 = vpop.xlane.xlu2 %210  ;;  %v467_v0 = vld [vmem:[%s761_s4] ss:$0 sm:$0xff] }
  0xbe   :  { %v100_v5 = vpop.xlane.xlu0 %99  ;;  %v267_v40 = vperm.slane %v211_v4, %v652_v41 }
  0xbf   :  { %v169_v12 = vperm.slane %v100_v5, %v678_v55  ;;  %v186_v15 = vsel %vm170_vm7, %v185_v3, %v184_v8 }
  0xc1   :  { %v171_v17 = vsel %vm170_vm7, %v169_v12, %v167_v13 }
  0xc2   :  { %v188_v18 = vsel %vm187_vm8, %v186_v15, %v171_v17 }
  0xc3   :  { %v190_v19 = vadd.f32 %v188_v18, %v76_v16 }
  0xc4   :  { %v214_v24 = vpop.xlane.xlu1 %213 }
  0xc5   :  { %192 = vst.msk [vmem:[#allocation2] sm:$0x3] %vm41_vm0, %v190_v19  ;;  %v238_v34 = vpop.xlane.xlu2 %237  ;;  %v269_v42 = vperm.slane %v214_v24, %v664_v48 }
  0xc6   :  { %v235_v26 = vpop.xlane.xlu0 %234  ;;  %v284_v14 = vperm.slane %v238_v34, %v664_v48 }
  0xc7   :  { %v282_v31 = vperm.slane %v235_v26, %v652_v41  ;;  %v268_v41 = vsel %vm162_vm5, %v267_v40, %v266_v39 }
  0xc8   :  { %v270_v48 = vsel %vm166_vm6, %v269_v42, %v268_v41 }
  0xc9   :  { %v283_v43 = vsel %vm162_vm5, %v282_v31, %v281_v33 }
  0xca   :  { %v285_v47 = vsel %vm166_vm6, %v284_v14, %v283_v43 }
  0xcc   :  { %v295_v32 = vld [vmem:[#allocation2] sm:$0x3]  ;;  %v241_v44 = vpop.xlane.xlu1 %240 }
  0xcd   :  { %v296_v38 = vmul.f32 0.00390625, %v295_v32  ;;  %v286_v45 = vperm.slane %v241_v44, %v678_v55 }
  0xce   :  { %v217_v46 = vpop.xlane.xlu0 %216 }
  0xcf   :  { %v271_v49 = vperm.slane %v217_v46, %v678_v55  ;;  %453 = vmatmul.msk.f32.vlgmr.msra.gmra.mxu0 %vm312_vm9, %v296_v38  ;;  %v287_v50 = vsel %vm170_vm7, %v286_v45, %v285_v47  ;;  %v307_v55 = vld [vmem:[%s760_s3] sm:$0xf]  ;;  %s441_s3 = sshll.u32 %s529_s2, 4  ;;  %s442_s3 = int_to_ptr.vmem [resolvable:$true] %s441_s3 }
  0xd0   :  { %455 = vmatpush.msk.msra.mxu2 %vm368_vm10, %v307_v55  ;;  %457 = vmatpush.msk.msra.mxu3 %vm368_vm10, %v307_v55 }
  0xd1   :  { %v272_v52 = vsel %vm170_vm7, %v271_v49, %v270_v48 }
  0xd2   :  { %v288_v53 = vsel %vm187_vm8, %v287_v50, %v272_v52 }
  0xd3   :  { %v290_v54 = vmax.f32 %v193_v51, %v288_v53 }
  0xd5   :  { %291 = vst.msk [vmem:[#allocation3] sm:$0x3] %vm41_vm0, %v290_v54 }
  0xdc   :  { %v297_v56 = vld [vmem:[#allocation3] sm:$0x3] }
  0xdd   :  { %454 = vmatmul.msk.f32.vlgmr.msra.gmra.mxu1 %vm312_vm9, %v297_v56 }
 0x14c   :  { %v333_v58 = vpop.f32.mrf.mxu0 }
 0x14d   :  { %v334_v59 = vadd.f32 %v466_v57, %v333_v58 }
 0x14f   :  { %v336_v60 = vmax.f32 %v334_v59, 0.0 }
 0x151   :  { %456 = vmatmul.msk.f32.vlgmr.msra.gmra.mxu2 %vm364_vm11, %v336_v60 }
 0x15a   :  { %v357_v61 = vpop.f32.mrf.mxu1 }
 0x15b   :  { %v358_v62 = vadd.f32 %v466_v57, %v357_v61 }
 0x15d   :  { %v360_v63 = vmax.f32 %v358_v62, 0.0 }
 0x15f   :  { %458 = vmatmul.msk.f32.vlgmr.msra.gmra.mxu3 %vm364_vm11, %v360_v63 }
 0x1d4   :  { %v389_v1 = vpop.f32.mrf.mxu2 }
 0x1d5   :  { %v390_v3 = vadd.f32 %v467_v0, %v389_v1 }
 0x1e2   :  { %v412_v2 = vpop.f32.mrf.mxu3 }
 0x1e3   :  { %v413_v4 = vadd.f32 %v467_v0, %v412_v2 }
 0x1e5   :  { %v415_v5 = vadd.f32 %v413_v4, %v390_v3 }
 0x1e7   :  { %v459_v6 = vmul.f32 -1.442695, %v415_v5 }
 0x1e9   :  { %468 = vpow2.f32 %v459_v6 }
 0x1ef   :  { %v469_v8 = vpop.eup %468 }
 0x1f0   :  { %v419_v12 = vadd.f32 1.0, %v469_v8 }
 0x1f2   :  { %470 = vrcp.f32 %v419_v12  ;;  %v431_v17 = vand.u32 2147483648, %v419_v12  ;;  %v429_v19 = vand.u32 2147483647, %v419_v12  ;;  %vm425_vm13 = vweird.f32 %v419_v12 }
 0x1f4   :  { %v432_v21 = vor.u32 1.1754944e-38, %v431_v17  ;;  %vm430_vm15 = vcmp.eq.f32.partialorder %v429_v19, 8.507059e+37 }
 0x1f8   :  { %v471_v13 = vpop.eup %470 }
 0x1f9   :  { %v421_v15 = vmul.f32 %v471_v13, %v419_v12  ;;  %vm426_vm12 = vweird.f32 %v471_v13 }
 0x1fa   :  { %vm427_vm14 = vmor %vm425_vm13, %vm426_vm12 }
 0x1fb   :  { %v422_v16 = vsub.f32 1.0, %v421_v15 }
 0x1fd   :  { %v423_v18 = vmul.f32 %v471_v13, %v422_v16 }
 0x1ff   :  { %v424_v20 = vadd.f32 %v471_v13, %v423_v18 }
 0x201   :  { %v428_v23 = vsel %vm427_vm14, %v471_v13, %v424_v20 }
 0x202   :  { %v433_v24 = vsel %vm430_vm15, %v432_v21, %v428_v23 }
 0x203   :  { %435 = vst.msk [vmem:[#allocation7] sm:$0x3] %vm41_vm0, %v433_v24 }
 0x204   :  { %446 = dma.vmem_to_hbm [thread:$0]  %s442_s3, 32, %s444_s21, [#allocation6]  }
 0x205   :  { %522 = dma.done.wait [#allocation6], 32  }
 0x206   :  { %523 = vsyncadd [#allocation6], 4294967264 }
 0x207   :  { %451 = vsyncpa [#allocation5], 1 }
 0x208   :  { %452 = vsyncpa [#allocation6], 1 }

</bundles_post_ra>
